<compile_context>
chip_gen: v5e
topology: v5e:2x2
jax: 0.10.0
libtpu: 0.0.40
codegen_flags: <defaults>
</compile_context>

<pallas_src>
import math

import jax
import jax.numpy as jnp
from jax.experimental import pallas as pl
from jax.experimental.pallas import tpu as pltpu


def _attention_kernel_masked(q_ref, k_ref, v_ref, m_ref, out_ref, attn_ref):
    """One grid step = one batch element (all H heads) x one query tile.

    q_ref:    (1, H, TQ, D)
    k_ref:    (1, H, S,  D)
    v_ref:    (1, H, S,  D)
    m_ref:    (1, 1, TQ, S)  int8: nonzero = keep, 0 = masked
    out_ref:  (1, H, TQ, D)
    attn_ref: (1, H, TQ, S)
    """
    keep = m_ref[0, 0] != 0            # (TQ, S) bool, shared across heads
    _attention_core(q_ref, k_ref, v_ref, out_ref, attn_ref, keep)


def _attention_kernel_nomask(q_ref, k_ref, v_ref, out_ref, attn_ref):
    _attention_core(q_ref, k_ref, v_ref, out_ref, attn_ref, None)


def _attention_core(q_ref, k_ref, v_ref, out_ref, attn_ref, keep):
    q = q_ref[0]                       # (H, TQ, D)
    k = k_ref[0]                       # (H, S,  D)
    v = v_ref[0]                       # (H, S,  D)

    d = q.shape[-1]
    scale = 1.0 / math.sqrt(d)

    # Fold the 1/sqrt(d) scale into Q (cheaper than scaling (H,TQ,S) scores).
    q_scaled = (q.astype(jnp.float32) * jnp.float32(scale)).astype(q.dtype)

    # scores = (Q/sqrt(d)) K^T; contract last dims directly (no transpose),
    # batched over heads -> straight MXU matmuls with f32 accumulation.
    s = jnp.einsum("hqd,hkd->hqk", q_scaled, k,
                   preferred_element_type=jnp.float32)

    if keep is not None:
        # masked_fill with a large finite negative: matches -inf masking after
        # exp (underflows to exactly 0) but cannot NaN on fully-masked rows.
        s = jnp.where(keep[None, :, :], s, jnp.float32(-1e30))

    # numerically-stable row softmax; reciprocal on the otherwise-idle EUP.
    s_max = jnp.max(s, axis=-1, keepdims=True)
    p = jnp.exp(s - s_max)
    denom = jnp.sum(p, axis=-1, keepdims=True)
    p = p * pl.reciprocal(denom, approx=True)

    # dropout(p) with p=0.0 -> identity.
    # TODO(synk): training-mode dropout via pltpu.prng_* when p > 0.

    attn_ref[0] = p.astype(attn_ref.dtype)
    out_ref[0] = jnp.einsum("hqk,hkd->hqd", p.astype(v.dtype), v,
                            preferred_element_type=jnp.float32
                            ).astype(out_ref.dtype)


@jax.jit
def attention_pallas(query, key, value, mask=None):
    """query/key/value: [B, H, S, D]; mask: optional bool [B, 1, S, S] (True=keep).

    Returns (context [B, H, S, D], attention_weights [B, H, S, S]).
    """
    B, H, S, D = query.shape
    if mask is not None:
        assert mask.shape == (B, 1, S, S), "mask must be [B, 1, S, S]"

    # Query-tile size: whole S for small sequences, 128-row tiles for long ones
    # (keeps per-step attn block lane/sublane aligned and VMEM-bounded).
    if S <= 256 or S % 128 != 0:
        tq = S
    else:
        tq = 128
    n_q = S // tq

    q_spec = pl.BlockSpec((1, H, tq, D), lambda b, qi: (b, 0, qi, 0))
    kv_spec = pl.BlockSpec((1, H, S, D), lambda b, qi: (b, 0, 0, 0))
    out_spec = pl.BlockSpec((1, H, tq, D), lambda b, qi: (b, 0, qi, 0))
    att_spec = pl.BlockSpec((1, H, tq, S), lambda b, qi: (b, 0, qi, 0))

    out_shape = (
        jax.ShapeDtypeStruct((B, H, S, D), query.dtype),
        jax.ShapeDtypeStruct((B, H, S, S), query.dtype),
    )
    compiler_params = pltpu.CompilerParams(
        # Both grid axes are independent -> eligible for megacore sharding.
        dimension_semantics=("parallel", "parallel"),
        vmem_limit_bytes=48 * 1024 * 1024,
    )

    if mask is None:
        out, attn = pl.pallas_call(
            _attention_kernel_nomask,
            out_shape=out_shape,
            grid_spec=pltpu.PrefetchScalarGridSpec(
                num_scalar_prefetch=0,
                grid=(B, n_q),
                in_specs=[q_spec, kv_spec, kv_spec],
                out_specs=[out_spec, att_spec],
            ),
            compiler_params=compiler_params,
        )(query, key, value)
        return out, attn

    # Keep the mask un-broadcast over heads and narrow (int8): the head
    # broadcast happens in-register inside the kernel, not in HBM.
    m8 = mask.astype(jnp.int8)
    msk_spec = pl.BlockSpec((1, 1, tq, S), lambda b, qi: (b, 0, qi, 0))

    out, attn = pl.pallas_call(
        _attention_kernel_masked,
        out_shape=out_shape,
        grid_spec=pltpu.PrefetchScalarGridSpec(
            num_scalar_prefetch=0,
            grid=(B, n_q),
            in_specs=[q_spec, kv_spec, kv_spec, msk_spec],
            out_specs=[out_spec, att_spec],
        ),
        compiler_params=compiler_params,
    )(query, key, value, m8)

    return out, attn


def _reference(query, key, value, mask):
    d = query.shape[-1]
    s = jnp.einsum("bhqd,bhkd->bhqk", query, key).astype(jnp.float32) / math.sqrt(d)
    if mask is not None:
        s = jnp.where(mask, s, -jnp.inf)
    p = jax.nn.softmax(s, axis=-1)
    out = jnp.einsum("bhqk,bhkd->bhqd", p, value.astype(jnp.float32))
    return out.astype(query.dtype), p.astype(query.dtype)


if __name__ == "__main__":
    B, H, S, D = 2, 2, 16, 32
    key0 = jax.random.PRNGKey(0)
    kq, kk, kv = jax.random.split(key0, 3)

    query = jax.random.normal(kq, (B, H, S, D), dtype=jnp.float32)
    key_t = jax.random.normal(kk, (B, H, S, D), dtype=jnp.float32)
    value = jax.random.normal(kv, (B, H, S, D), dtype=jnp.float32)

    # causal mask shared across heads: True = attend
    causal = jnp.tril(jnp.ones((S, S), dtype=bool))
    mask = jnp.broadcast_to(causal, (B, 1, S, S))

    # masked path
    out, attn = attention_pallas(query, key_t, value, mask)
    jax.block_until_ready((out, attn))
    out_ref, attn_ref = _reference(query, key_t, value, mask)
    # approx=True reciprocal (EUP) -> slightly looser tolerances than exact.
    assert jnp.allclose(out, out_ref, atol=5e-3, rtol=5e-3), "context mismatch"
    assert jnp.allclose(attn, attn_ref, atol=5e-3, rtol=5e-3), "attn weights mismatch"

    # unmasked path (mask=None in the module signature)
    out2, attn2 = attention_pallas(query, key_t, value, None)
    jax.block_until_ready((out2, attn2))
    out_ref2, attn_ref2 = _reference(query, key_t, value, None)
    assert jnp.allclose(out2, out_ref2, atol=5e-3, rtol=5e-3), "context mismatch (no mask)"
    assert jnp.allclose(attn2, attn_ref2, atol=5e-3, rtol=5e-3), "attn mismatch (no mask)"

    print("KERNEL_OK")
</pallas_src>

<mosaic_0001>
module attributes {stable_mosaic.version = 11 : i64} {
  func.func @_attention_kernel_masked(%arg0: i32, %arg1: i32, %arg2: memref<1x2x16x32xf32, #tpu.memory_space<vmem>>, %arg3: memref<1x2x16x32xf32, #tpu.memory_space<vmem>>, %arg4: memref<1x2x16x32xf32, #tpu.memory_space<vmem>>, %arg5: memref<1x1x16x16xi8, #tpu.memory_space<vmem>>, %arg6: memref<1x2x16x32xf32, #tpu.memory_space<vmem>>, %arg7: memref<1x2x16x16xf32, #tpu.memory_space<vmem>>) attributes {dimension_semantics = [#tpu.dimension_semantics<parallel>, #tpu.dimension_semantics<parallel>], iteration_bounds = array<i64: 2, 1>, scalar_prefetch = 0 : i64, scratch_operands = 0 : i64, tpu.core_type = #tpu.core_type<tc>, window_params = [{transform_indices = @transform_0, window_bounds = array<i64: 1, 2, 16, 32>}, {transform_indices = @transform_1, window_bounds = array<i64: 1, 2, 16, 32>}, {transform_indices = @transform_2, window_bounds = array<i64: 1, 2, 16, 32>}, {transform_indices = @transform_3, window_bounds = array<i64: 1, 1, 16, 16>}, {transform_indices = @transform_4, window_bounds = array<i64: 1, 2, 16, 32>}, {transform_indices = @transform_5, window_bounds = array<i64: 1, 2, 16, 16>}]} {
    %c0 = arith.constant 0 : index
    %c0_0 = arith.constant 0 : index
    %c0_1 = arith.constant 0 : index
    %c0_2 = arith.constant 0 : index
    %0 = vector.load %arg5[%c0, %c0_0, %c0_1, %c0_2] : memref<1x1x16x16xi8, #tpu.memory_space<vmem>>, vector<1x1x16x16xi8>
    %1 = vector.shape_cast %0 : vector<1x1x16x16xi8> to vector<16x16xi8>
    %c0_i8 = arith.constant 0 : i8
    %2 = vector.broadcast %c0_i8 : i8 to vector<16x16xi8>
    %3 = arith.cmpi ne, %1, %2 : vector<16x16xi8>
    %c0_3 = arith.constant 0 : index
    %c0_4 = arith.constant 0 : index
    %c0_5 = arith.constant 0 : index
    %c0_6 = arith.constant 0 : index
    %4 = vector.load %arg2[%c0_3, %c0_4, %c0_5, %c0_6] : memref<1x2x16x32xf32, #tpu.memory_space<vmem>>, vector<1x2x16x32xf32>
    %5 = vector.shape_cast %4 : vector<1x2x16x32xf32> to vector<2x16x32xf32>
    %c0_7 = arith.constant 0 : index
    %c0_8 = arith.constant 0 : index
    %c0_9 = arith.constant 0 : index
    %c0_10 = arith.constant 0 : index
    %6 = vector.load %arg3[%c0_7, %c0_8, %c0_9, %c0_10] : memref<1x2x16x32xf32, #tpu.memory_space<vmem>>, vector<1x2x16x32xf32>
    %7 = vector.shape_cast %6 : vector<1x2x16x32xf32> to vector<2x16x32xf32>
    %c0_11 = arith.constant 0 : index
    %c0_12 = arith.constant 0 : index
    %c0_13 = arith.constant 0 : index
    %c0_14 = arith.constant 0 : index
    %8 = vector.load %arg4[%c0_11, %c0_12, %c0_13, %c0_14] : memref<1x2x16x32xf32, #tpu.memory_space<vmem>>, vector<1x2x16x32xf32>
    %9 = vector.shape_cast %8 : vector<1x2x16x32xf32> to vector<2x16x32xf32>
    %cst = arith.constant 0.176776692 : f32
    %10 = vector.broadcast %cst : f32 to vector<2x16x32xf32>
    %11 = arith.mulf %5, %10 : vector<2x16x32xf32>
    "tpu.trace_start"() <{level = 10 : i32, message = "hqd,hkd->hqk"}> : () -> ()
    %cst_15 = arith.constant dense<0.000000e+00> : vector<2x16x16xf32>
    %12 = tpu.matmul %11, %7, %cst_15 {dimension_numbers = #tpu.dot_dimension_numbers<[2], [2], [1], [1], [0, 0, 0, 1, 1, 1], [0], [0]>} : vector<2x16x32xf32>, vector<2x16x32xf32>, vector<2x16x16xf32> -> vector<2x16x16xf32>
    "tpu.trace_stop"() : () -> ()
    %13 = vector.shape_cast %3 : vector<16x16xi1> to vector<1x16x16xi1>
    %cst_16 = arith.constant -1.000000e+30 : f32
    %14 = vector.shape_cast %13 : vector<1x16x16xi1> to vector<1x16x16xi1>
    %15 = vector.broadcast %14 : vector<1x16x16xi1> to vector<2x16x16xi1>
    %16 = vector.broadcast %cst_16 : f32 to vector<2x16x16xf32>
    %17 = arith.select %15, %12, %16 : vector<2x16x16xi1>, vector<2x16x16xf32>
    %cst_17 = arith.constant dense<0xFF800000> : vector<2x16xf32>
    %18 = vector.multi_reduction <maximumf>, %17, %cst_17 [2] : vector<2x16x16xf32> to vector<2x16xf32>
    %19 = vector.shape_cast %18 : vector<2x16xf32> to vector<2x16x1xf32>
    %20 = vector.broadcast %19 : vector<2x16x1xf32> to vector<2x16x16xf32>
    %21 = arith.subf %17, %20 : vector<2x16x16xf32>
    %22 = math.exp %21 : vector<2x16x16xf32>
    %cst_18 = arith.constant dense<0.000000e+00> : vector<2x16xf32>
    %23 = vector.multi_reduction <add>, %22, %cst_18 [2] : vector<2x16x16xf32> to vector<2x16xf32>
    %24 = vector.shape_cast %23 : vector<2x16xf32> to vector<2x16x1xf32>
    %25 = tpu.reciprocal %24 {approx = true} : vector<2x16x1xf32> -> vector<2x16x1xf32>
    %26 = vector.broadcast %25 : vector<2x16x1xf32> to vector<2x16x16xf32>
    %27 = arith.mulf %22, %26 : vector<2x16x16xf32>
    %c0_19 = arith.constant 0 : index
    %c0_20 = arith.constant 0 : index
    %c0_21 = arith.constant 0 : index
    %c0_22 = arith.constant 0 : index
    %28 = vector.load %arg7[%c0_19, %c0_20, %c0_21, %c0_22] : memref<1x2x16x16xf32, #tpu.memory_space<vmem>>, vector<1x2x16x16xf32>
    %29 = vector.shape_cast %28 : vector<1x2x16x16xf32> to vector<2x16x16xf32>
    %30 = vector.shape_cast %27 : vector<2x16x16xf32> to vector<1x2x16x16xf32>
    tpu.vector_store %arg7[%c0_19, %c0_20, %c0_21, %c0_22], %30 {strides = array<i32>} : memref<1x2x16x16xf32, #tpu.memory_space<vmem>>, vector<1x2x16x16xf32>,
    "tpu.trace_start"() <{level = 10 : i32, message = "hqk,hkd->hqd"}> : () -> ()
    %cst_23 = arith.constant dense<0.000000e+00> : vector<2x16x32xf32>
    %31 = tpu.matmul %27, %9, %cst_23 {dimension_numbers = #tpu.dot_dimension_numbers<[2], [1], [1], [2], [0, 0, 0, 1, 1, 2], [0], [0]>} : vector<2x16x16xf32>, vector<2x16x32xf32>, vector<2x16x32xf32> -> vector<2x16x32xf32>
    "tpu.trace_stop"() : () -> ()
    %c0_24 = arith.constant 0 : index
    %c0_25 = arith.constant 0 : index
    %c0_26 = arith.constant 0 : index
    %c0_27 = arith.constant 0 : index
    %32 = vector.load %arg6[%c0_24, %c0_25, %c0_26, %c0_27] : memref<1x2x16x32xf32, #tpu.memory_space<vmem>>, vector<1x2x16x32xf32>
    %33 = vector.shape_cast %32 : vector<1x2x16x32xf32> to vector<2x16x32xf32>
    %34 = vector.shape_cast %31 : vector<2x16x32xf32> to vector<1x2x16x32xf32>
    tpu.vector_store %arg6[%c0_24, %c0_25, %c0_26, %c0_27], %34 {strides = array<i32>} : memref<1x2x16x32xf32, #tpu.memory_space<vmem>>, vector<1x2x16x32xf32>,
    return
  }
  func.func @transform_0(%arg0: i32, %arg1: i32) -> (i32, i32, i32, i32) {
    %c0_i32 = arith.constant 0 : i32
    %c0_i32_0 = arith.constant 0 : i32
    %c0_i32_1 = arith.constant 0 : i32
    return %arg0, %c0_i32, %arg1, %c0_i32_0 : i32, i32, i32, i32
  }
  func.func @transform_1(%arg0: i32, %arg1: i32) -> (i32, i32, i32, i32) {
    %c0_i32 = arith.constant 0 : i32
    %c0_i32_0 = arith.constant 0 : i32
    %c0_i32_1 = arith.constant 0 : i32
    %c0_i32_2 = arith.constant 0 : i32
    return %arg0, %c0_i32, %c0_i32_0, %c0_i32_1 : i32, i32, i32, i32
  }
  func.func @transform_2(%arg0: i32, %arg1: i32) -> (i32, i32, i32, i32) {
    %c0_i32 = arith.constant 0 : i32
    %c0_i32_0 = arith.constant 0 : i32
    %c0_i32_1 = arith.constant 0 : i32
    %c0_i32_2 = arith.constant 0 : i32
    return %arg0, %c0_i32, %c0_i32_0, %c0_i32_1 : i32, i32, i32, i32
  }
  func.func @transform_3(%arg0: i32, %arg1: i32) -> (i32, i32, i32, i32) {
    %c0_i32 = arith.constant 0 : i32
    %c0_i32_0 = arith.constant 0 : i32
    %c0_i32_1 = arith.constant 0 : i32
    return %arg0, %c0_i32, %arg1, %c0_i32_0 : i32, i32, i32, i32
  }
  func.func @transform_4(%arg0: i32, %arg1: i32) -> (i32, i32, i32, i32) {
    %c0_i32 = arith.constant 0 : i32
    %c0_i32_0 = arith.constant 0 : i32
    %c0_i32_1 = arith.constant 0 : i32
    return %arg0, %c0_i32, %arg1, %c0_i32_0 : i32, i32, i32, i32
  }
  func.func @transform_5(%arg0: i32, %arg1: i32) -> (i32, i32, i32, i32) {
    %c0_i32 = arith.constant 0 : i32
    %c0_i32_0 = arith.constant 0 : i32
    %c0_i32_1 = arith.constant 0 : i32
    return %arg0, %c0_i32, %arg1, %c0_i32_0 : i32, i32, i32, i32
  }
}

</mosaic_0001>

<bundles_post_ra>
// kernel: attention_pallas.1
= control target key start
LH: loop header
LB: loop body
LE: loop exit
PB: predicated region body
PF: predicated region fallthrough
CT: control target
= control target key end

     0   :  { %s1451_s0 = inlined_call_operand.hbm [shape: f32[2,2,16,32], index: 0, kind: input, shape index: {}]   ;;  %s1452_s1 = inlined_call_operand.hbm [shape: f32[2,2,16,32], index: 1, kind: input, shape index: {}]   ;;  %s1453_s2 = inlined_call_operand.hbm [shape: f32[2,2,16,32], index: 2, kind: input, shape index: {}]   ;;  %s1454_s3 = inlined_call_operand.vmem [shape: s8[2,1,16,16], index: 3, kind: input, shape index: {}]   ;;  %s1455_s4 = inlined_call_operand.hbm [shape: f32[2,2,16,32], index: 4, kind: output, shape index: {0}]   ;;  %s1456_s5 = inlined_call_operand.hbm [shape: f32[2,2,16,16], index: 5, kind: output, shape index: {1}]  }
   0x1   :  { %1464 = sst [smem:[#allocation22_spill]] %s1452_s1 }
   0x2   :  { %11 = vsyncpa [#allocation3], 0 }
   0x3   :  { %13 = vsyncpa [#allocation3 + $0x1], 0 }
   0x4   :  { %14 = vsyncpa [#allocation6], 0 }
   0x5   :  { %16 = vsyncpa [#allocation6 + $0x1], 0 }
   0x6   :  { %17 = vsyncpa [#allocation4], 0 }
   0x7   :  { %19 = vsyncpa [#allocation4 + $0x1], 0 }
   0x8   :  { %20 = vsyncpa [#allocation10], 0 }
   0x9   :  { %22 = vsyncpa [#allocation10 + $0x1], 0  ;;  %s1230_s18 = smov 0   ;;  %s1232_s19 = smov 0  }
   0xa   :  { %s1234_s20 = smov 0   ;;  %s1236_s21 = smov 0  }
   0xb   :  { %s1238_s22 = smov 0   ;;  %s1240_s23 = smov 0  }
   0xc LB: > { %1465 = sst [smem:[#allocation15_spill]] %s1173_s18  ;;  %s1261_s24 = sadd.s32 4294967295, %s1193_s23   ;;  %s1193_s23 = sphi %s1240_s23, %s28_s23   ;;  %s1189_s22 = sphi %s1238_s22, %s1485_s22   ;;  %s1185_s21 = sphi %s1236_s21, %s1484_s21   ;;  %s1181_s20 = sphi %s1234_s20, %s1483_s20   ;;  %s1177_s19 = sphi %s1232_s19, %s1487_s19   ;;  %s1173_s18 = sphi %s1230_s18, %s1486_s18  }
   0xd   : > { %1466 = sst [smem:[#allocation16_spill]] %s1181_s20  ;;  %s841_s25 = sadd.s32 4294967294, %s1193_s23  }
   0xe   : > { %1467 = sst [smem:[#allocation17_spill]] %s1189_s22  ;;  %s40_s26 = sadd.s32 1, %s1189_s22 }
   0xf   : > { %1468 = sst [smem:[#allocation18_spill]] %s1193_s23  ;;  %s49_s27 = sadd.s32 1, %s1181_s20 }
  0x10   : > { %p42_p0 = scmp.ge.s32.totalorder %s40_s26, 2  ;;  %p56_p1 = scmp.ne.s32.totalorder %s1181_s20, %s1177_s19 }
  0x11   : > { %p57_p2 = scmp.eq.s32.totalorder %s1193_s23, 0  ;;  %p62_p3 = scmp.ne.s32.totalorder %s1177_s19, %s1173_s18 }
  0x12   : > { %s1489_s26 = smov (%p42_p0, %s40_s26), 0  ;;  %p63_p5 = scmp.eq.s32.totalorder %s1261_s24, 0 }
  0x13   : > { %1469 = sst [smem:[#allocation19_spill]] %s1489_s26  ;;  %p1273_p4 = por %p57_p2, %p56_p1 }
  0x14   : > { %s44_s29 = ssub.s32 %s1189_s22, %s1489_s26  ;;  %p168_p6 = scmp.eq.s32.totalorder %s1261_s24, 1 }
  0x15   : > { %p47_p7 = scmp.eq.s32.totalorder %s44_s29, 0  ;;  %p1281_p8 = por %p63_p5, %p62_p3 }
  0x16   : > { %p1285_p9 = por %p168_p6, %p56_p1  ;;  %p174_p10 = scmp.eq.s32.totalorder %s841_s25, 1 }
  0x17   : > { %s1290_s7 = scalar_select %p47_p7, %s1181_s20, %s49_s27  }
  0x18   : > { %p1292_p11 = por %p174_p10, %p62_p3  ;;  %p843_p12 = scmp.ge.s32.totalorder %s1193_s23, 2 }
  0x19   : > { %1473 = sst [smem:[#allocation20_spill]] %s1290_s7  ;;  %p914_p13 = scmp.lt.s32.totalorder %s1193_s23, 2 }
  0x1a   : > { %s1474_s8 = scalar_select %p1292_p11, 1, 0 }
  0x1b   : > { %s222_s9 = sand.u32 1, %s1181_s20   ;;  %s881_s11 = sshll.u32 %s1189_s22, 5 }
  0x1c   : > { %1475 = sst [smem:[#allocation21_spill]] %s1474_s8  ;;  %s1299_s10 = sshll.u32 %s222_s9, 5 }
  0x1d   : > { %p1304_p0 = pnand %p914_p13, %p1273_p4  ;;  %s246_s13 = sand.u32 1, %s1193_s23  }
  0x1e   : > { %s1477_s1 = sld [smem:[#allocation22_spill]]  ;;  %s250_s25 = scalar_lea.vmem [#allocation5], %s1299_s10 }
  0x1f   : > { %s258_s27 = sshll.u32 %s250_s25, 4  ;;  %s247_s29 = scalar_lea.sflag [#allocation6], %s246_s13  ;;  %s259_s27 = int_to_ptr.vmem [resolvable:$true] %s258_s27 }
  0x20   : > { %s1195_s26 = smov 128   ;;  %s1196_s28 = smov 8  }
  0x21   : > { %p853_p1 = scmp.ge.s32.totalorder %s1193_s23, 1  ;;  %p301_p2 = scmp.lt.s32.totalorder %s1193_s23, 3 }
  0x22   : > { %s223_s13 = scalar_lea.sflag [#allocation3], %s222_s9  ;;  %s277_s20 = scalar_lea.hbm %s1453_s2, %s881_s11 }
  0x23   : > { %p1317_p3 = pnand %p853_p1, %p301_p2  ;;  %s278_s23 = sshll.u32 %s277_s20, 4  ;;  %s279_s23 = int_to_ptr.hbm [resolvable:$true] %s278_s23 }
  0x24   : > { %s255_s16 = scalar_lea.hbm %s1477_s1, %s881_s11  ;;  %s226_s1 = scalar_lea.vmem [#allocation2], %s1299_s10 }
  0x25   : > { %s256_s17 = sshll.u32 %s255_s16, 4  ;;  %s233_s16 = scalar_lea.hbm %s1451_s0, %s881_s11  ;;  %s257_s17 = int_to_ptr.hbm [resolvable:$true] %s256_s17 }
  0x26   : > { %903 = dma.hbm_to_vmem [thread:$0]  (!%p1304_p0), %s257_s17, 512, %s259_s27, %s247_s29, %s1195_s26, %s1195_s26, %s1196_s28  }
  0x27   : > { %s234_s25 = sshll.u32 %s233_s16, 4  ;;  %s236_s7 = sshll.u32 %s226_s1, 4  ;;  %s235_s25 = int_to_ptr.hbm [resolvable:$true] %s234_s25  ;;  %s237_s7 = int_to_ptr.vmem [resolvable:$true] %s236_s7 }
  0x28   : > { %900 = dma.hbm_to_vmem [thread:$0]  (!%p1304_p0), %s235_s25, 512, %s237_s7, %s223_s13, %s1195_s26, %s1195_s26, %s1196_s28  }
  0x29   : > { %s272_s8 = scalar_lea.vmem [#allocation7], %s1299_s10  ;;  %305 = sbr.rel (%p1317_p3) target bundleno = 591 (0x24f), region = 36 }
  0x2a   : > { %s280_s18 = sshll.u32 %s272_s8, 4  ;;  %s1336_s1 = sand.u32 (!%p1317_p3), 1, %s1177_s19   ;;  %s281_s18 = int_to_ptr.vmem [resolvable:$true] %s280_s18 }
  0x2b   : > { %906 = dma.hbm_to_vmem [thread:$0]  (!%p1304_p0), %s279_s23, 512, %s281_s18, %s247_s29, %s1195_s26, %s1195_s26, %s1196_s28  }
  0x2c   : > { %s1339_s7 = sshll.u32 (!%p1317_p3), %s1336_s1, 5  ;;  %s308_s9 = scalar_lea.sflag (!%p1317_p3), [#allocation3], %s1336_s1 }
  0x2d   : > { %s311_s20 = scalar_lea.vmem (!%p1317_p3), [#allocation2], %s1339_s7 }
  0x2e   : > { %1156 = dma.done.wait (%p1281_p8), %s308_s9, 512  }
  0x2f   : > { %1158 = vsyncadd (%p1281_p8), %s308_s9, 4294966784  ;;  %s317_s18 = sand.u32 1, %s1261_s24   ;;  %s321_s23 = scalar_lea.vmem [#allocation5], %s1339_s7 }
  0x30   : > { %s318_s22 = scalar_lea.sflag [#allocation6], %s317_s18 }
  0x31   : > { %1160 = dma.done.wait (%p1281_p8), %s318_s22, 1024  }
  0x32   : > { %1162 = vsyncadd (%p1281_p8), %s318_s22, 4294966272  ;;  %vm418_vm0 = vcmask 261120   ;;  %v407_v0 = vld [vmem:[%s321_s23 + $0x8] sm:$0xff]  ;;  %v402_v1 = vld [vmem:[%s311_s20] sm:$0xff]  ;;  %p385_p4 = scmp.lt.s32.totalorder %s1185_s21, 1  ;;  %v1197_v13 = vmov 0  }
  0x33   : > { %861 = vmatpush.xpose.msk.msra.mxu0 %vm418_vm0, %v407_v0  ;;  %v409_v2 = vld [vmem:[%s321_s23 + $0x18] sm:$0xff]  ;;  %v406_v3 = vld [vmem:[%s321_s23] sm:$0xff]  ;;  %v404_v4 = vld [vmem:[%s311_s20 + $0x10] sm:$0xff]  ;;  %v414_v6 = vmul.f32 0.17677669, %v402_v1  ;;  %vm503_vm4 = vcmask 130048  }
  0x34   : > { %865 = vmatpush.xpose.msk.msra.mxu1 %vm418_vm0, %v409_v2  ;;  %v408_v5 = vld [vmem:[%s321_s23 + $0x10] sm:$0xff]  ;;  %v416_v7 = vmul.f32 0.17677669, %v404_v4  ;;  %v403_v8 = vld [vmem:[%s311_s20 + $0x8] sm:$0xff]  ;;  %v405_v9 = vld [vmem:[%s311_s20 + $0x18] sm:$0xff]  ;;  %s386_s24 = scalar_select %p385_p4, %s1185_s21, 1 }
  0x35   : > { %v415_v10 = vmul.f32 0.17677669, %v403_v8  ;;  %v417_v11 = vmul.f32 0.17677669, %v405_v9  ;;  %s331_s11 = scalar_lea.vmem [#allocation7], %s1339_s7  ;;  %s382_s12 = scalar_lea.vmem [#allocation9], %s1339_s7 }
  0x36   : > { %s884_s26 = sshll.u32 %s386_s24, 2  ;;  %v411_v51 = vld [vmem:[%s331_s11 + $0x8] sm:$0xff]  ;;  %v410_v52 = vld [vmem:[%s331_s11] sm:$0xff]  ;;  %v413_v53 = vld [vmem:[%s331_s11 + $0x18] sm:$0xff]  ;;  %s885_s29 = sshll.u32 %s1185_s21, 5 }
  0x37   : > { %862 = vmatpush.xpose.msk.msra.mxu0 %vm418_vm0, %v406_v3  ;;  %s392_s10 = scalar_lea.vmem %s1454_s3, %s884_s26  ;;  %572 = vmatpush.msra.mxu2 %v411_v51  ;;  %v412_v54 = vld [vmem:[%s331_s11 + $0x10] sm:$0xff]  ;;  %s652_s15 = scalar_lea.hbm %s1456_s5, %s885_s29 }
  0x38   : > { %866 = vmatpush.xpose.msk.msra.mxu1 %vm418_vm0, %v408_v5  ;;  %v398_v12 = vld [vmem:[%s392_s10] sm:$0x3]  ;;  %v399_v15 = vld [vmem:[%s392_s10 + $0x2] sm:$0x3]  ;;  %601 = vmatpush.msra.mxu3 %v413_v53  ;;  %s653_s16 = sshll.u32 %s382_s12, 4  ;;  %s655_s25 = sshll.u32 %s652_s15, 4  ;;  %s654_s16 = int_to_ptr.vmem [resolvable:$true] %s653_s16  ;;  %s656_s25 = int_to_ptr.hbm [resolvable:$true] %s655_s25 }
  0x39   : > { %vm400_vm1 = vnez %v398_v12  ;;  %vm401_vm2 = vnez %v399_v15  ;;  %573 = vmatpush.msra.mxu2 %v410_v52  ;;  %s620_s13 = scalar_lea.sflag [#allocation10], %s1336_s1  ;;  %s1089_s17 = sshra.s32 %s656_s25, 4  ;;  %s1090_s17 = int_to_ptr.hbm [resolvable:$true] %s1089_s17 }
  0x3a   : > { %863 = vmatmul.msk.f32.vlgmr.msra.gmra.mxu0 %vm418_vm0, %v414_v6  ;;  %v489_v14 = vsel %vm400_vm1, 16843009, %v1197_v13  ;;  %v490_v17 = vsel %vm401_vm2, 16843009, %v1197_v13  ;;  %602 = vmatpush.msra.mxu3 %v412_v54  ;;  %s1091_s27 = scalar_lea.hbm %s1090_s17, 32  ;;  %s1095_s18 = scalar_lea.hbm %s1456_s5, 64 }
  0x3b   : > { %867 = vmatmul.msk.f32.vlgmr.msra.gmra.mxu1 %vm418_vm0, %v416_v7  ;;  %v491_v16 = vunpack.c.0.s8 %v489_v14  ;;  %v492_v22 = vunpack.c.0.s8 %v490_v17  ;;  %p1092_p5 = scmp.ne.s32.totalorder %s1090_s17, %s1091_s27  ;;  %p1096_p8 = scmp.lt.s32.totalorder %s1090_s17, %s1456_s5 }
  0x3c   : > { %p1097_p10 = scmp.lt.s32.totalorder %s1095_s18, %s1091_s27 }
  0x3d   : > { %vm493_vm3 = vcmp.ne.s32.totalorder %v491_v16, 0  ;;  %vm494_vm5 = vcmp.ne.s32.totalorder %v492_v22, 0  ;;  %p1093_p6 = pnand %p1092_p5, %p1285_p9 }
  0x3e   : > { %p1098_p13 = por %p1097_p10, %p1096_p8 }
  0x3f   : > { %p1094_p7 = pneg %p1093_p6 }
  0x41   : > { %p1099_p0 = pnand %p1098_p13, %p1094_p7 }
  0x42   : > { %864 = vmatmul.msk.f32.gmra.mxu0 %vm418_vm0, %v415_v10 }
  0x43   : > { %868 = vmatmul.msk.f32.gmra.mxu1 %vm418_vm0, %v417_v11 }
  0xb7   : > { %v448_v18 = vpop.f32.mrf.mxu0 }
  0xb8   : > { %v499_v19 = vsel %vm493_vm3, %v448_v18, -1e+30  ;;  %v483_v20 = vpop.f32.mrf.mxu1 }
  0xb9   : > { %v504_v21 = vsel %vm503_vm4, %v499_v19, -inf  ;;  %v501_v23 = vsel %vm493_vm3, %v483_v20, -1e+30 }
  0xba   : > { %505 = vmax.xlane.f32.xlu0 %v504_v21  ;;  %v510_v25 = vsel %vm503_vm4, %v501_v23, -inf }
  0xbf   : > { %v451_v24 = vpop.f32.mrf.mxu0 }
  0xc0   : > { %v500_v26 = vsel %vm494_vm5, %v451_v24, -1e+30  ;;  %v486_v28 = vpop.f32.mrf.mxu1 }
  0xc1   : > { %v507_v27 = vsel %vm503_vm4, %v500_v26, -inf  ;;  %v502_v29 = vsel %vm494_vm5, %v486_v28, -1e+30 }
  0xc2   : > { %508 = vmax.xlane.f32.xlu1 %v507_v27  ;;  %511 = vmax.xlane.f32.xlu0 %v510_v25  ;;  %v513_v30 = vsel %vm503_vm4, %v502_v29, -inf }
  0xca   : > { %514 = vmax.xlane.f32.xlu1 %v513_v30 }
 0x12d   : > { %v506_v31 = vpop.xlane.xlu0 %505 }
 0x12e   : > { %v516_v32 = vsub.f32 %v499_v19, %v506_v31 }
 0x130   : > { %v520_v33 = vmul.f32 1.442695, %v516_v32 }
 0x132   : > { %969 = vpow2.f32 %v520_v33 }
 0x135   : > { %v509_v34 = vpop.xlane.xlu1 %508  ;;  %v512_v35 = vpop.xlane.xlu0 %511 }
 0x136   : > { %v517_v36 = vsub.f32 %v500_v26, %v509_v34  ;;  %v518_v37 = vsub.f32 %v501_v23, %v512_v35 }
 0x138   : > { %v970_v38 = vpop.eup %969  ;;  %v522_v39 = vmul.f32 1.442695, %v517_v36  ;;  %v524_v40 = vmul.f32 1.442695, %v518_v37 }
 0x139   : > { %v528_v41 = vsel %vm503_vm4, %v970_v38, 0.0 }
 0x13a   : > { %971 = vpow2.f32 %v522_v39  ;;  %529 = vadd.xlane.f32.xlu2 %v528_v41 }
 0x13b   : > { %973 = vpow2.f32 %v524_v40 }
 0x13d   : > { %v515_v42 = vpop.xlane.xlu1 %514 }
 0x13e   : > { %v519_v43 = vsub.f32 %v502_v29, %v515_v42 }
 0x140   : > { %v972_v44 = vpop.eup %971  ;;  %v526_v45 = vmul.f32 1.442695, %v519_v43 }
 0x141   : > { %v974_v46 = vpop.eup %973  ;;  %v531_v47 = vsel %vm503_vm4, %v972_v44, 0.0 }
 0x142   : > { %975 = vpow2.f32 %v526_v45  ;;  %532 = vadd.xlane.f32.xlu0 %v531_v47  ;;  %v534_v48 = vsel %vm503_vm4, %v974_v46, 0.0 }
 0x143   : > { %535 = vadd.xlane.f32.xlu2 %v534_v48 }
 0x148   : > { %v976_v49 = vpop.eup %975 }
 0x149   : > { %v537_v50 = vsel %vm503_vm4, %v976_v49, 0.0 }
 0x14a   : > { %538 = vadd.xlane.f32.xlu1 %v537_v50 }
 0x1ad   : > { %v530_v55 = vpop.xlane.xlu2 %529 }
 0x1ae   : > { %977 = vrcp.f32 %v530_v55 }
 0x1b4   : > { %v978_v56 = vpop.eup %977 }
 0x1b5   : > { %v533_v57 = vpop.xlane.xlu0 %532  ;;  %v544_v58 = vmul.f32 %v978_v56, %v970_v38 }
 0x1b6   : > { %v536_v59 = vpop.xlane.xlu2 %535  ;;  %979 = vrcp.f32 %v533_v57 }
 0x1b7   : > { %981 = vrcp.f32 %v536_v59  ;;  %548 = vst.msk [vmem:[%s382_s12] sm:$0xff] %vm503_vm4, %v544_v58  ;;  %869 = vmatmul.msk.f32.vlgmr.msra.gmra.mxu2 %vm503_vm4, %v544_v58 }
 0x1bc   : > { %v980_v60 = vpop.eup %979 }
 0x1bd   : > { %v982_v61 = vpop.eup %981  ;;  %v539_v62 = vpop.xlane.xlu1 %538  ;;  %v545_v63 = vmul.f32 %v980_v60, %v972_v44 }
 0x1be   : > { %983 = vrcp.f32 %v539_v62  ;;  %v546_v0 = vmul.f32 %v982_v61, %v974_v46 }
 0x1bf   : > { %549 = vst.msk [vmem:[%s382_s12 + $0x8] sm:$0xff] %vm503_vm4, %v545_v63  ;;  %870 = vmatmul.msk.f32.gmra.mxu2 %vm503_vm4, %v545_v63 }
 0x1c0   : > { %550 = vst.msk [vmem:[%s382_s12 + $0x10] sm:$0xff] %vm503_vm4, %v546_v0  ;;  %871 = vmatmul.msk.f32.vlgmr.msra.gmra.mxu3 %vm503_vm4, %v546_v0 }
 0x1c4   : > { %v984_v1 = vpop.eup %983 }
 0x1c5   : > { %v547_v2 = vmul.f32 %v984_v1, %v976_v49 }
 0x1c7   : > { %551 = vst.msk [vmem:[%s382_s12 + $0x18] sm:$0xff] %vm503_vm4, %v547_v2 }
 0x1c8   : > { %872 = vmatmul.msk.f32.gmra.mxu3 %vm503_vm4, %v547_v2 }
 0x1c9   : > { %1102 = shalt.err (!%p1099_p0)
}
 0x1ca   : > { %s1198_s24 = smov 128   ;;  %s1199_s26 = smov 8  }
 0x1cb   : > { %894 = dma.vmem_to_hbm [thread:$0]  (%p1285_p9), %s654_s16, 512, %s656_s25, %s620_s13, %s1198_s24, %s1198_s24, %s1199_s26  }
 0x1cc   : > { %s375_s30 = scalar_lea.vmem [#allocation8], %s1339_s7  ;;  %s633_s11 = scalar_lea.hbm %s1455_s4, %s885_s29 }
 0x1cd   : > { %s634_s12 = sshll.u32 %s375_s30, 4  ;;  %s636_s28 = sshll.u32 %s633_s11, 4  ;;  %s635_s12 = int_to_ptr.vmem [resolvable:$true] %s634_s12  ;;  %s637_s28 = int_to_ptr.hbm [resolvable:$true] %s636_s28 }
 0x1ce   : > { %s615_s7 = scalar_lea.sflag [#allocation4], %s1336_s1  ;;  %s1117_s14 = sshra.s32 %s637_s28, 4  ;;  %s1118_s14 = int_to_ptr.hbm [resolvable:$true] %s1117_s14 }
 0x1cf   : > { %s1119_s15 = scalar_lea.hbm %s1118_s14, 32  ;;  %s1123_s25 = scalar_lea.hbm %s1455_s4, 64 }
 0x1d0   : > { %p1120_p1 = scmp.ne.s32.totalorder %s1118_s14, %s1119_s15  ;;  %p1124_p4 = scmp.lt.s32.totalorder %s1118_s14, %s1455_s4 }
 0x1d1   : > { %p1125_p5 = scmp.lt.s32.totalorder %s1123_s25, %s1119_s15 }
 0x1d2   : > { %p1121_p2 = pnand %p1120_p1, %p1285_p9 }
 0x1d3   : > { %p1126_p6 = por %p1125_p5, %p1124_p4 }
 0x1d4   : > { %p1122_p3 = pneg %p1121_p2 }
 0x1d6   : > { %p1127_p7 = pnand %p1126_p6, %p1122_p3 }
 0x23a   : > { %v575_v3 = vpop.f32.mrf.mxu2 }
 0x23b   : > { %610 = vst.msk [vmem:[%s375_s30] sm:$0xff] %vm418_vm0, %v575_v3 }
 0x242   : > { %v578_v4 = vpop.f32.mrf.mxu2 }
 0x243   : > { %611 = vst.msk [vmem:[%s375_s30 + $0x8] sm:$0xff] %vm418_vm0, %v578_v4  ;;  %v604_v5 = vpop.f32.mrf.mxu3 }
 0x244   : > { %612 = vst.msk [vmem:[%s375_s30 + $0x10] sm:$0xff] %vm418_vm0, %v604_v5 }
 0x24b   : > { %v607_v6 = vpop.f32.mrf.mxu3 }
 0x24c   : > { %613 = vst.msk [vmem:[%s375_s30 + $0x18] sm:$0xff] %vm418_vm0, %v607_v6 }
 0x24d   : > { %1130 = shalt.err (!%p1127_p7)
}
 0x24e   : > { %893 = dma.vmem_to_hbm [thread:$0]  (%p1285_p9), %s635_s12, 512, %s637_s28, %s615_s7, %s1198_s24, %s1198_s24, %s1199_s26  }
 0x24f PF: > { %s1479_s1 = sld [smem:[#allocation15_spill]]  ;;  %p908_p8 = pnand %p843_p12, %p1292_p11 }
 0x250   : > { %s1481_s27 = sld [smem:[#allocation18_spill]] }
 0x251   : > { %p909_p10 = pneg %p908_p8 }
 0x255   : > { %s670_s9 = sand.u32 1, %s1479_s1  }
 0x256   : > { %s671_s20 = scalar_lea.sflag [#allocation4], %s670_s9 }
 0x257   : > { %1164 = dma.done.wait (%p909_p10), %s671_s20, 512  }
 0x258   : > { %1166 = vsyncadd (%p909_p10), %s671_s20, 4294966784  ;;  %s681_s18 = scalar_lea.sflag [#allocation10], %s670_s9 }
 0x259   : > { %1168 = dma.done.wait (%p909_p10), %s681_s18, 512  }
 0x25a   : > { %1170 = vsyncadd (%p909_p10), %s681_s18, 4294966784  ;;  %s28_s23 = sadd.s32 1, %s1481_s27   ;;  %s1482_s6 = sld [smem:[#allocation16_spill]] }
 0x25b   : > { %p25_p13 = scmp.ge.s32.totalorder %s28_s23, 4   ;;  %s1483_s20 = sld [smem:[#allocation20_spill]] }
 0x25c   : > { %s1484_s21 = sld [smem:[#allocation17_spill]]  ;;  %s1486_s18 = smov %s1177_s19 }
 0x25d   : > { %s1485_s22 = sld [smem:[#allocation19_spill]]  ;;  %27 = sbr.rel (!%p25_p13) target bundleno = 12 (0xc), region = 125 }
 0x260   : > { %s1487_s19 = smov %s1482_s6 }
 0x262   :  { %687 = vsyncpa [#allocation3], 1 }
 0x263   :  { %689 = vsyncpa [#allocation3 + $0x1], 1 }
 0x264   :  { %690 = vsyncpa [#allocation6], 1 }
 0x265   :  { %692 = vsyncpa [#allocation6 + $0x1], 1 }
 0x266   :  { %693 = vsyncpa [#allocation4], 1 }
 0x267   :  { %695 = vsyncpa [#allocation4 + $0x1], 1 }
 0x268   :  { %696 = vsyncpa [#allocation10], 1 }
 0x269   :  { %698 = vsyncpa [#allocation10 + $0x1], 1 }

</bundles_post_ra>
